<compile_context>
chip_gen: v7x
topology: tpu7x:2x2x1
jax: 0.10.0
libtpu: 0.0.40
codegen_flags: <defaults>
</compile_context>

<pallas_src>
import jax
import jax.numpy as jnp
from jax.experimental import pallas as pl
from jax.experimental.pallas import tpu as pltpu

LANE = 128           # vreg lane width (feature dims padded to this)
BATCH_ALIGN = 16     # bf16 native sublane tile -> batch tile multiple of 16
MIN_ROWS_PER_CORE = 128   # only split the batch across 2 grid steps if each
                          # step still fills at least one MXU row block


def _round_up(x, m):
    return ((x + m - 1) // m) * m


# ----------------------------------------------------------------------------
# Kernel
# ----------------------------------------------------------------------------
def mlp_kernel(x_ref, w1_ref, b1_ref, w2_ref, b2_ref, o_ref):
    # Cast x f32 -> bf16 on the VPU (hidden under the MXU); weights arrive
    # pre-packed in bf16.
    x_bf16 = x_ref[...].astype(jnp.bfloat16)

    # fc1: [tile_n, D_in_p] @ [D_in_p, H_p] -> f32 accumulate on the MXU.
    h = jnp.dot(x_bf16, w1_ref[...], preferred_element_type=jnp.float32)
    # bias + ReLU in f32 on the VPU; b1 is a full-lane [1, H_p] row.
    h = jnp.maximum(h + b1_ref[...], 0.0)

    # dropout -> identity (eval mode)
    # TODO(synk): training-mode dropout (Bernoulli mask via pltpu.prng_*) not wired.

    # fc2: [tile_n, H_p] @ [H_p, D_out_p] -> f32 accumulate.
    out = jnp.dot(h.astype(jnp.bfloat16), w2_ref[...],
                  preferred_element_type=jnp.float32)
    o_ref[...] = (out + b2_ref[...]).astype(o_ref.dtype)


# ----------------------------------------------------------------------------
# One-time weight packing (hoisted out of the per-call forward path)
# ----------------------------------------------------------------------------
def pack_params(w1, b1, w2, b2):
    """Pad feature dims to 128 lanes and cast weights to bf16, once."""
    d_in, h_dim = w1.shape
    d_out = w2.shape[1]
    # Defensive reshape: accept (H,) / (1, H) bias shapes alike.
    b1 = jnp.reshape(b1, (1, h_dim))
    b2 = jnp.reshape(b2, (1, d_out))

    d_in_p = _round_up(d_in, LANE)
    h_p = _round_up(h_dim, LANE)
    d_out_p = _round_up(d_out, LANE)

    # Zero padding is value-preserving: padded W1 cols + zero b1 entries give
    # h_pad = 0 (ReLU keeps it 0), and padded W2 rows are zero, so padded
    # lanes contribute nothing to the real output columns.
    w1p = jnp.pad(w1, ((0, d_in_p - d_in), (0, h_p - h_dim))).astype(jnp.bfloat16)
    b1p = jnp.pad(b1, ((0, 0), (0, h_p - h_dim))).astype(jnp.float32)
    w2p = jnp.pad(w2, ((0, h_p - h_dim), (0, d_out_p - d_out))).astype(jnp.bfloat16)
    b2p = jnp.pad(b2, ((0, 0), (0, d_out_p - d_out))).astype(jnp.float32)

    return {
        "w1p": w1p, "b1p": b1p, "w2p": w2p, "b2p": b2p,
        "d_in": d_in, "h": h_dim, "d_out": d_out,
        "d_in_p": d_in_p, "h_p": h_p, "d_out_p": d_out_p,
    }


# ----------------------------------------------------------------------------
# Forward wrapper
# ----------------------------------------------------------------------------
def mlp_forward(x, params, *, tile_n=1024, out_dtype=jnp.bfloat16):
    """out = relu(x @ W1 + b1) @ W2 + b2, using pre-packed `params`."""
    N, d_in = x.shape
    assert d_in == params["d_in"], "x feature dim does not match packed params"
    d_in_p, h_p, d_out_p = params["d_in_p"], params["h_p"], params["d_out_p"]
    d_out = params["d_out"]

    # --- batch tile selection ---
    # Multiple of 16 (bf16 output sublane tile); clamp to the (padded) batch.
    tile_n = max(BATCH_ALIGN, min(tile_n, _round_up(N, BATCH_ALIGN)))
    tile_n = _round_up(tile_n, BATCH_ALIGN)
    # v7x megacore: make sure medium/large batches give >= 2 parallel grid
    # steps so both TensorCores get work (no-op on single-TC v5e/v6e).
    if N >= 2 * MIN_ROWS_PER_CORE and _round_up(N, tile_n) // tile_n < 2:
        tile_n = _round_up((N + 1) // 2, BATCH_ALIGN)
    n_p = _round_up(N, tile_n)

    # --- pad x (kept in its native dtype; bf16 cast happens in-kernel) ---
    if n_p == N and d_in_p == d_in:
        xp = x
    else:
        xp = jnp.pad(x, ((0, n_p - N), (0, d_in_p - d_in)))

    grid = (n_p // tile_n,)

    x_item = jnp.dtype(xp.dtype).itemsize
    o_item = jnp.dtype(out_dtype).itemsize
    w_bytes = (params["w1p"].nbytes + params["b1p"].nbytes
               + params["w2p"].nbytes + params["b2p"].nbytes)

    flops = 2 * n_p * (d_in_p * h_p + h_p * d_out_p)
    bytes_accessed = (n_p * d_in_p * x_item + w_bytes + n_p * d_out_p * o_item)

    # VMEM budget: double-buffered x/out tiles, (worst-case double-buffered)
    # resident weights, plus f32 intermediates.  2x headroom, clamped to the
    # smallest per-TC VMEM across generations (v7x: 64 MiB).
    vmem_est = (2 * tile_n * d_in_p * x_item
                + 2 * tile_n * d_out_p * o_item
                + 2 * w_bytes
                + tile_n * h_p * 4 + tile_n * d_out_p * 4)
    vmem_limit = int(min(max(2 * vmem_est, 8 << 20), 64 << 20))

    out_padded = pl.pallas_call(
        mlp_kernel,
        out_shape=jax.ShapeDtypeStruct((n_p, d_out_p), out_dtype),
        grid=grid,
        in_specs=[
            # x: pipelined over the batch grid.
            pl.BlockSpec((tile_n, d_in_p), lambda i: (i, 0)),
            # weights / biases: same block every step -> VMEM-resident.
            pl.BlockSpec((d_in_p, h_p), lambda i: (0, 0)),
            pl.BlockSpec((1, h_p), lambda i: (0, 0)),
            pl.BlockSpec((h_p, d_out_p), lambda i: (0, 0)),
            pl.BlockSpec((1, d_out_p), lambda i: (0, 0)),
        ],
        out_specs=pl.BlockSpec((tile_n, d_out_p), lambda i: (i, 0)),
        compiler_params=pltpu.CompilerParams(
            dimension_semantics=("parallel",),
            vmem_limit_bytes=vmem_limit,
        ),
        cost_estimate=pl.CostEstimate(
            flops=flops, transcendentals=0, bytes_accessed=bytes_accessed),
    )(xp, params["w1p"], params["b1p"], params["w2p"], params["b2p"])

    # Strip batch padding and the padded output lanes.
    return out_padded[:N, :d_out]


# ----------------------------------------------------------------------------
# Init (mimics nn.Linear's U(-1/sqrt(fan_in), 1/sqrt(fan_in)))
# ----------------------------------------------------------------------------
def init_params(key, input_dim, hidden_dim, output_dim, dtype=jnp.float32):
    k1, k2, k3, k4 = jax.random.split(key, 4)
    bound1 = 1.0 / (input_dim ** 0.5)
    bound2 = 1.0 / (hidden_dim ** 0.5)
    w1 = jax.random.uniform(k1, (input_dim, hidden_dim), dtype, -bound1, bound1)
    b1 = jax.random.uniform(k2, (hidden_dim,), dtype, -bound1, bound1)
    w2 = jax.random.uniform(k3, (hidden_dim, output_dim), dtype, -bound2, bound2)
    b2 = jax.random.uniform(k4, (output_dim,), dtype, -bound2, bound2)
    return w1, b1, w2, b2


if __name__ == "__main__":
    # Shapes implied by the module: input_dim = embedding dim (128 in the
    # surrounding script), hidden_dim = 64, output_dim = #classes (small).
    N, INPUT_DIM, HIDDEN_DIM, OUTPUT_DIM = 8, 128, 64, 8

    key = jax.random.PRNGKey(0)
    kx, kp = jax.random.split(key)
    x = jax.random.normal(kx, (N, INPUT_DIM), jnp.float32)
    w1, b1, w2, b2 = init_params(kp, INPUT_DIM, HIDDEN_DIM, OUTPUT_DIM)

    # One-time weight packing (reused across calls in real inference loops).
    packed = pack_params(w1, b1, w2, b2)

    out = mlp_forward(x, packed)
    out = jax.block_until_ready(out)

    # Cross-check against plain-JAX f32 reference (bf16 MXU operands + bf16
    # output -> loose tolerance).
    ref = jnp.maximum(x @ w1 + b1[None, :], 0.0) @ w2 + b2[None, :]
    out_f32 = out.astype(jnp.float32)
    assert out.shape == (N, OUTPUT_DIM)
    assert jnp.allclose(out_f32, ref, atol=5e-2, rtol=5e-2), float(
        jnp.max(jnp.abs(out_f32 - ref)))

    print("KERNEL_OK")
</pallas_src>

<mosaic_0001>
module attributes {stable_mosaic.version = 11 : i64} {
  func.func @mlp_kernel(%arg0: i32, %arg1: memref<16x128xf32, #tpu.memory_space<vmem>>, %arg2: memref<128x128xbf16, #tpu.memory_space<vmem>>, %arg3: memref<1x128xf32, #tpu.memory_space<vmem>>, %arg4: memref<128x128xbf16, #tpu.memory_space<vmem>>, %arg5: memref<1x128xf32, #tpu.memory_space<vmem>>, %arg6: memref<16x128xbf16, #tpu.memory_space<vmem>>) attributes {dimension_semantics = [#tpu.dimension_semantics<parallel>], iteration_bounds = array<i64: 1>, scalar_prefetch = 0 : i64, scratch_operands = 0 : i64, tpu.core_type = #tpu.core_type<tc>, window_params = [{transform_indices = @transform_0, window_bounds = array<i64: 16, 128>}, {pipeline_mode = #tpu.pipeline_mode<synchronous>, transform_indices = @transform_1, window_bounds = array<i64: 128, 128>}, {pipeline_mode = #tpu.pipeline_mode<synchronous>, transform_indices = @transform_2, window_bounds = array<i64: 1, 128>}, {pipeline_mode = #tpu.pipeline_mode<synchronous>, transform_indices = @transform_3, window_bounds = array<i64: 128, 128>}, {pipeline_mode = #tpu.pipeline_mode<synchronous>, transform_indices = @transform_4, window_bounds = array<i64: 1, 128>}, {transform_indices = @transform_5, window_bounds = array<i64: 16, 128>}]} {
    %c0 = arith.constant 0 : index
    %c0_0 = arith.constant 0 : index
    %0 = vector.load %arg1[%c0, %c0_0] : memref<16x128xf32, #tpu.memory_space<vmem>>, vector<16x128xf32>
    %1 = arith.truncf %0 : vector<16x128xf32> to vector<16x128xbf16>
    %c0_1 = arith.constant 0 : index
    %c0_2 = arith.constant 0 : index
    %2 = vector.load %arg2[%c0_1, %c0_2] : memref<128x128xbf16, #tpu.memory_space<vmem>>, vector<128x128xbf16>
    %cst = arith.constant dense<0.000000e+00> : vector<16x128xf32>
    %3 = tpu.matmul %1, %2, %cst {dimension_numbers = #tpu.dot_dimension_numbers<[1], [0], [0], [1], [0, 0, 1, 1], [], []>} : vector<16x128xbf16>, vector<128x128xbf16>, vector<16x128xf32> -> vector<16x128xf32>
    %c0_3 = arith.constant 0 : index
    %c0_4 = arith.constant 0 : index
    %4 = vector.load %arg3[%c0_3, %c0_4] : memref<1x128xf32, #tpu.memory_space<vmem>>, vector<1x128xf32>
    %5 = vector.broadcast %4 : vector<1x128xf32> to vector<16x128xf32>
    %6 = arith.addf %3, %5 : vector<16x128xf32>
    %cst_5 = arith.constant 0.000000e+00 : f32
    %7 = vector.broadcast %cst_5 : f32 to vector<16x128xf32>
    %8 = arith.maximumf %6, %7 : vector<16x128xf32>
    %9 = arith.truncf %8 : vector<16x128xf32> to vector<16x128xbf16>
    %c0_6 = arith.constant 0 : index
    %c0_7 = arith.constant 0 : index
    %10 = vector.load %arg4[%c0_6, %c0_7] : memref<128x128xbf16, #tpu.memory_space<vmem>>, vector<128x128xbf16>
    %cst_8 = arith.constant dense<0.000000e+00> : vector<16x128xf32>
    %11 = tpu.matmul %9, %10, %cst_8 {dimension_numbers = #tpu.dot_dimension_numbers<[1], [0], [0], [1], [0, 0, 1, 1], [], []>} : vector<16x128xbf16>, vector<128x128xbf16>, vector<16x128xf32> -> vector<16x128xf32>
    %c0_9 = arith.constant 0 : index
    %c0_10 = arith.constant 0 : index
    %12 = vector.load %arg5[%c0_9, %c0_10] : memref<1x128xf32, #tpu.memory_space<vmem>>, vector<1x128xf32>
    %13 = vector.broadcast %12 : vector<1x128xf32> to vector<16x128xf32>
    %14 = arith.addf %11, %13 : vector<16x128xf32>
    %15 = arith.truncf %14 : vector<16x128xf32> to vector<16x128xbf16>
    %c0_11 = arith.constant 0 : index
    %c0_12 = arith.constant 0 : index
    %16 = vector.load %arg6[%c0_11, %c0_12] : memref<16x128xbf16, #tpu.memory_space<vmem>>, vector<16x128xbf16>
    tpu.vector_store %arg6[%c0_11, %c0_12], %15 {strides = array<i32>} : memref<16x128xbf16, #tpu.memory_space<vmem>>, vector<16x128xbf16>,
    return
  }
  func.func @transform_0(%arg0: i32) -> (i32, i32) {
    %c0_i32 = arith.constant 0 : i32
    %c0_i32_0 = arith.constant 0 : i32
    return %arg0, %c0_i32 : i32, i32
  }
  func.func @transform_1(%arg0: i32) -> (i32, i32) {
    %c0_i32 = arith.constant 0 : i32
    %c0_i32_0 = arith.constant 0 : i32
    %c0_i32_1 = arith.constant 0 : i32
    return %c0_i32, %c0_i32_0 : i32, i32
  }
  func.func @transform_2(%arg0: i32) -> (i32, i32) {
    %c0_i32 = arith.constant 0 : i32
    %c0_i32_0 = arith.constant 0 : i32
    %c0_i32_1 = arith.constant 0 : i32
    return %c0_i32, %c0_i32_0 : i32, i32
  }
  func.func @transform_3(%arg0: i32) -> (i32, i32) {
    %c0_i32 = arith.constant 0 : i32
    %c0_i32_0 = arith.constant 0 : i32
    %c0_i32_1 = arith.constant 0 : i32
    return %c0_i32, %c0_i32_0 : i32, i32
  }
  func.func @transform_4(%arg0: i32) -> (i32, i32) {
    %c0_i32 = arith.constant 0 : i32
    %c0_i32_0 = arith.constant 0 : i32
    %c0_i32_1 = arith.constant 0 : i32
    return %c0_i32, %c0_i32_0 : i32, i32
  }
  func.func @transform_5(%arg0: i32) -> (i32, i32) {
    %c0_i32 = arith.constant 0 : i32
    %c0_i32_0 = arith.constant 0 : i32
    return %arg0, %c0_i32 : i32, i32
  }
}

</mosaic_0001>

<bundles_post_ra>
// kernel: tpu_custom_call.1
= control target key start
LH: loop header
LB: loop body
LE: loop exit
PB: predicated region body
PF: predicated region fallthrough
CT: control target
= control target key end

     0   :  { %10 = vsyncpa [#allocation3], 0  ;;  %s629_s0 = inlined_call_operand.hbm [shape: f32[16,128], index: 0, kind: input, shape index: {}]   ;;  %s630_s1 = inlined_call_operand.hbm [shape: bf16[128,128], index: 1, kind: input, shape index: {}]   ;;  %s631_s2 = inlined_call_operand.vmem [shape: f32[1,128], index: 2, kind: input, shape index: {}]   ;;  %s632_s3 = inlined_call_operand.hbm [shape: bf16[128,128], index: 3, kind: input, shape index: {}]   ;;  %s633_s4 = inlined_call_operand.vmem [shape: f32[1,128], index: 4, kind: input, shape index: {}]   ;;  %s634_s5 = inlined_call_operand.hbm [shape: bf16[16,128], index: 5, kind: output, shape index: {}]  }
   0x1   :  { %11 = vsyncpa [#allocation6], 0 }
   0x2   :  { %12 = vsyncpa [#allocation4], 0  ;;  %s526_s18 = smov [#allocation5]   ;;  %s432_s22 = scalar_lea.hbm %s630_s1, 1024 }
   0x3   :  { %s30_s19 = sshll.u32 %s526_s18, 4  ;;  %p433_p0 = scmp.ne.s32.totalorder %s630_s1, %s432_s22  ;;  %s31_s19 = int_to_ptr.vmem [resolvable:$true] %s30_s19 }
   0x4   :  { %p436_p1 = scmp.lt.u32.totalorder %s432_s22, %s630_s1 }
   0x6   :  { %p438_p2 = pnand %p436_p1, %p433_p0 }
   0x8   :  { %441 = shalt.err (!%p438_p2)
}
   0x9   :  { %s442_s27 = scalar_lea.vmem %s31_s19, 1024  ;;  %p447_p4 = scmp.lt.s32.totalorder %s31_s19, %s31_s19 }
   0xa   :  { %p443_p3 = scmp.ne.s32.totalorder %s31_s19, %s442_s27  ;;  %p448_p5 = scmp.lt.s32.totalorder %s442_s27, %s442_s27 }
   0xc   :  { %p449_p6 = por %p448_p5, %p447_p4 }
   0xe   :  { %p450_p7 = pnand %p449_p6, %p443_p3 }
  0x10   :  { %453 = shalt.err (!%p450_p7)
}
  0x11   :  { %s527_s28 = smov 64   ;;  %s528_s29 = smov 4  }
  0x12   :  { %36 = dma.hbm_to_vmem [thread:$0]  %s630_s1, 1024, %s31_s19, [#allocation6], %s527_s28, %s527_s28, %s528_s29  }
  0x13   :  { %s529_s7 = smov [#allocation2]   ;;  %s454_s11 = scalar_lea.hbm %s629_s0, 256 }
  0x14   :  { %s18_s8 = sshll.u32 %s529_s7, 4  ;;  %p455_p8 = scmp.ne.s32.totalorder %s629_s0, %s454_s11  ;;  %s19_s8 = int_to_ptr.vmem [resolvable:$true] %s18_s8 }
  0x15   :  { %p458_p9 = scmp.lt.u32.totalorder %s454_s11, %s629_s0 }
  0x17   :  { %p460_p10 = pnand %p458_p9, %p455_p8 }
  0x19   :  { %463 = shalt.err (!%p460_p10)
}
  0x1a   :  { %s464_s16 = scalar_lea.vmem %s19_s8, 256  ;;  %p469_p12 = scmp.lt.s32.totalorder %s19_s8, %s19_s8 }
  0x1b   :  { %p465_p11 = scmp.ne.s32.totalorder %s19_s8, %s464_s16  ;;  %p470_p13 = scmp.lt.s32.totalorder %s464_s16, %s464_s16 }
  0x1d   :  { %p471_p0 = por %p470_p13, %p469_p12 }
  0x1f   :  { %p472_p1 = pnand %p471_p0, %p465_p11 }
  0x21   :  { %475 = shalt.err (!%p472_p1)
}
  0x22   :  { %s530_s1 = smov 128   ;;  %s531_s17 = smov 8  }
  0x23   :  { %24 = dma.hbm_to_vmem [thread:$0]  %s629_s0, 256, %s19_s8, [#allocation3], %s530_s1, %s530_s1, %s531_s17  }
  0x24   :  { %s532_s20 = smov [#allocation7]   ;;  %s476_s24 = scalar_lea.hbm %s632_s3, 1024 }
  0x25   :  { %s44_s21 = sshll.u32 %s532_s20, 4  ;;  %p477_p2 = scmp.ne.s32.totalorder %s632_s3, %s476_s24  ;;  %s45_s21 = int_to_ptr.vmem [resolvable:$true] %s44_s21 }
  0x26   :  { %p480_p3 = scmp.lt.u32.totalorder %s476_s24, %s632_s3 }
  0x28   :  { %p482_p4 = pnand %p480_p3, %p477_p2 }
  0x2a   :  { %485 = shalt.err (!%p482_p4)
}
  0x2b   :  { %s486_s6 = scalar_lea.vmem %s45_s21, 1024  ;;  %p491_p6 = scmp.lt.s32.totalorder %s45_s21, %s45_s21 }
  0x2c   :  { %p487_p5 = scmp.ne.s32.totalorder %s45_s21, %s486_s6  ;;  %p492_p7 = scmp.lt.s32.totalorder %s486_s6, %s486_s6 }
  0x2e   :  { %p493_p8 = por %p492_p7, %p491_p6 }
  0x30   :  { %p494_p9 = pnand %p493_p8, %p487_p5 }
  0x32   :  { %497 = shalt.err (!%p494_p9)
}
  0x33   :  { %50 = dma.hbm_to_vmem [thread:$0]  %s632_s3, 1024, %s45_s21, [#allocation6], %s527_s28, %s527_s28, %s528_s29  }
  0x34   :  { %520 = dma.done.wait [#allocation3], 256  }
  0x35   :  { %521 = vsyncadd [#allocation3], 4294967040 }
  0x36   :  { %522 = dma.done.wait [#allocation6], 2048  }
  0x37   :  { %523 = vsyncadd [#allocation6], 4294965248  ;;  %v533_v0 = vmov 0.0   ;;  %vm534_vm0 = vmmov 0   ;;  %v416_v1 = vld [vmem:[#allocation5] sm:$0xff]   ;;  %v417_v2 = vld [vmem:[#allocation5 + $0x8] sm:$0xff]  }
  0x38   :  { %366 = vmatprep.subr.bf16.mxu0 %v533_v0  ;;  %382 = vmatprep.mubr.msk.bf16.mxu0 %vm534_vm0, %v533_v0  ;;  %v418_v3 = vld [vmem:[#allocation5 + $0x10] sm:$0xff]   ;;  %v424_v4 = vld [vmem:[#allocation7] sm:$0xff]   ;;  %v419_v5 = vld [vmem:[#allocation5 + $0x18] sm:$0xff]   ;;  %s535_s11 = smov [#allocation8]  }
  0x39   :  { %386 = vmatprep.subr.bf16.mxu1 %v533_v0  ;;  %402 = vmatprep.mubr.msk.bf16.mxu1 %vm534_vm0, %v533_v0  ;;  %v425_v6 = vld [vmem:[#allocation7 + $0x8] sm:$0xff]   ;;  %v420_v7 = vld [vmem:[#allocation5 + $0x20] sm:$0xff]   ;;  %v426_v8 = vld [vmem:[#allocation7 + $0x10] sm:$0xff]   ;;  %s308_s12 = sshll.u32 %s535_s11, 4  ;;  %s309_s12 = int_to_ptr.vmem [resolvable:$true] %s308_s12 }
  0x3a   :  { %367 = vmatpush3.bf16.msra.mxu0 %v416_v1  ;;  %387 = vmatpush3.bf16.msra.mxu1 %v424_v4  ;;  %v421_v9 = vld [vmem:[#allocation5 + $0x28] sm:$0xff]   ;;  %v427_v10 = vld [vmem:[#allocation7 + $0x18] sm:$0xff]   ;;  %v422_v11 = vld [vmem:[#allocation5 + $0x30] sm:$0xff]   ;;  %p503_p11 = scmp.lt.s32.totalorder %s309_s12, %s309_s12 }
  0x3b   :  { %368 = vmatprep.subr.bf16.mxu0 %v533_v0  ;;  %388 = vmatprep.subr.bf16.mxu1 %v533_v0  ;;  %v428_v12 = vld [vmem:[#allocation7 + $0x20] sm:$0xff]   ;;  %v423_v13 = vld [vmem:[#allocation5 + $0x38] sm:$0xff]   ;;  %v63_v14 = vld [vmem:[#allocation2] sm:$0xff] }
  0x3c   :  { %v64_v15 = vld [vmem:[#allocation2 + $0x8] sm:$0xff]  ;;  %v429_v16 = vld [vmem:[#allocation7 + $0x28] sm:$0xff]   ;;  %v430_v18 = vld [vmem:[#allocation7 + $0x30] sm:$0xff]  }
  0x3d   :  { %v65_v17 = vpack.c.bf16 %v64_v15, %v63_v14  ;;  %v431_v19 = vld [vmem:[#allocation7 + $0x38] sm:$0xff]   ;;  %v321_v20 = vld [vmem:[%s631_s2] ss:$0 sm:$0xff]  ;;  %s498_s2 = scalar_lea.vmem %s309_s12, 128 }
  0x3e   :  { %369 = vmatpush3.bf16.msra.mxu0 %v417_v2  ;;  %389 = vmatpush3.bf16.msra.mxu1 %v425_v6  ;;  %v330_v30 = vld [vmem:[%s633_s4] ss:$0 sm:$0xff]  ;;  %p499_p10 = scmp.ne.s32.totalorder %s309_s12, %s498_s2  ;;  %p504_p12 = scmp.lt.s32.totalorder %s498_s2, %s498_s2 }
  0x3f   :  { %370 = vmatprep.subr.bf16.mxu0 %v533_v0  ;;  %390 = vmatprep.subr.bf16.mxu1 %v533_v0 }
  0x40   :  { %p505_p13 = por %p504_p12, %p503_p11 }
  0x42   :  { %371 = vmatpush3.bf16.msra.mxu0 %v418_v3  ;;  %391 = vmatpush3.bf16.msra.mxu1 %v426_v8  ;;  %p506_p0 = pnand %p505_p13, %p499_p10 }
  0x43   :  { %372 = vmatprep.subr.bf16.mxu0 %v533_v0  ;;  %392 = vmatprep.subr.bf16.mxu1 %v533_v0 }
  0x46   :  { %373 = vmatpush3.bf16.msra.mxu0 %v419_v5  ;;  %393 = vmatpush3.bf16.msra.mxu1 %v427_v10 }
  0x47   :  { %374 = vmatprep.subr.bf16.mxu0 %v533_v0  ;;  %394 = vmatprep.subr.bf16.mxu1 %v533_v0 }
  0x4a   :  { %375 = vmatpush3.bf16.msra.mxu0 %v420_v7  ;;  %395 = vmatpush3.bf16.msra.mxu1 %v428_v12 }
  0x4b   :  { %376 = vmatprep.subr.bf16.mxu0 %v533_v0  ;;  %396 = vmatprep.subr.bf16.mxu1 %v533_v0 }
  0x4e   :  { %377 = vmatpush3.bf16.msra.mxu0 %v421_v9  ;;  %397 = vmatpush3.bf16.msra.mxu1 %v429_v16 }
  0x4f   :  { %378 = vmatprep.subr.bf16.mxu0 %v533_v0  ;;  %398 = vmatprep.subr.bf16.mxu1 %v533_v0 }
  0x52   :  { %379 = vmatpush3.bf16.msra.mxu0 %v422_v11  ;;  %399 = vmatpush3.bf16.msra.mxu1 %v430_v18 }
  0x53   :  { %380 = vmatprep.subr.bf16.mxu0 %v533_v0  ;;  %400 = vmatprep.subr.bf16.mxu1 %v533_v0 }
  0x56   :  { %381 = vmatpush3.bf16.msra.mxu0 %v423_v13  ;;  %401 = vmatpush3.bf16.msra.mxu1 %v431_v19 }
  0x59   :  { %383 = vmatmul.mubr.bf16.vlgmr.msra.gmra.mrb[0].mxu0 %v65_v17 }
 0x12c   :  { %v171_v21 = vpop.f32.mrb[0].mxu0 }
 0x12d   :  { %v172_v22 = vadd.f32 %v321_v20, %v171_v21  ;;  %v384_v23 = vpop.f32.mrb[1].mxu0 }
 0x12e   :  { %v174_v24 = vpop.f32.mrb[2].mxu0 }
 0x12f   :  { %v175_v25 = vadd.f32 %v321_v20, %v174_v24  ;;  %v385_v26 = vpop.f32.mrb[3].mxu0  ;;  %v178_v27 = vmax.f32 %v172_v22, 0.0 }
 0x131   :  { %v179_v28 = vmax.f32 %v175_v25, 0.0 }
 0x133   :  { %v180_v29 = vpack.c.bf16 %v179_v28, %v178_v27 }
 0x135   :  { %403 = vmatmul.mubr.bf16.vlgmr.msra.gmra.mrb[0].mxu1 %v180_v29 }
 0x208   :  { %v286_v31 = vpop.f32.mrb[0].mxu1 }
 0x209   :  { %v404_v32 = vpop.f32.mrb[1].mxu1  ;;  %v287_v34 = vadd.f32 %v330_v30, %v286_v31 }
 0x20a   :  { %v289_v33 = vpop.f32.mrb[2].mxu1 }
 0x20b   :  { %v290_v35 = vadd.f32 %v330_v30, %v289_v33  ;;  %v405_v36 = vpop.f32.mrb[3].mxu1 }
 0x20d   :  { %v346_v37 = vpack.c.bf16 %v290_v35, %v287_v34 }
 0x20f   :  { %347 = vst [vmem:[#allocation8] sm:$0xff] %v346_v37  }
 0x210   :  { %509 = shalt.err (!%p506_p0)
}
 0x211   :  { %s510_s14 = scalar_lea.hbm %s634_s5, 128 }
 0x212   :  { %p511_p1 = scmp.ne.s32.totalorder %s634_s5, %s510_s14  ;;  %p514_p2 = scmp.lt.u32.totalorder %s510_s14, %s634_s5 }
 0x214   :  { %p516_p3 = pnand %p514_p2, %p511_p1 }
 0x216   :  { %519 = shalt.err (!%p516_p3)
}
 0x217   :  { %314 = dma.vmem_to_hbm [thread:$0]  %s309_s12, 128, %s634_s5, [#allocation4], %s527_s28, %s527_s28, %s528_s29  }
 0x218   :  { %524 = dma.done.wait [#allocation4], 128  }
 0x219   :  { %525 = vsyncadd [#allocation4], 4294967168 }
 0x21a   :  { %318 = vsyncpa [#allocation3], 1 }
 0x21b   :  { %319 = vsyncpa [#allocation6], 1 }
 0x21c   :  { %320 = vsyncpa [#allocation4], 1 }

</bundles_post_ra>
